<compile_context>
chip_gen: v7x
topology: tpu7x:2x2x1
jax: 0.10.0
libtpu: 0.0.40
codegen_flags: <defaults>
</compile_context>

<pallas_src>
import functools
import math

import jax
import jax.numpy as jnp
from jax import lax
from jax.experimental import pallas as pl
from jax.experimental.pallas import tpu as pltpu


def _round_up(x, m):
    return (x + m - 1) // m * m


def _vmem_capacity_bytes():
    try:
        fn = getattr(pltpu, "get_tpu_info", None)
        if fn is not None:
            info = fn()
            for name in ("vmem_capacity_bytes", "vmem_size_bytes", "vmem_bytes"):
                v = getattr(info, name, None)
                if v:
                    return int(v)
    except Exception:
        pass
    return 64 << 20          # conservative fallback (v7x-sized)


def _dwconv_kernel(*refs, n_planes, has_halo, groups, th, out_lanes, cgrp):
    """refs = (*plane_mains, [*plane_halos,] w_ref, shift_ref, o_ref)

    plane_mains[p]: (1, th, lanes_p) row tile of space-to-depth plane p (lanes = cols*C)
    plane_halos[p]: (1, 8,  lanes_p) next 8 rows of plane p (halo look-ahead)
    w_ref:          (9, out_lanes)   BN-scale-folded taps, pre-tiled along the lane axis
    shift_ref:      (1, out_lanes)   folded BN shift, pre-tiled along the lane axis
    o_ref:          (1, th, out_lanes)
    """
    mains = refs[:n_planes]
    if has_halo:
        halos = refs[n_planes:2 * n_planes]
        nin = 2 * n_planes
    else:
        halos = None
        nin = n_planes
    w_ref = refs[nin]
    shift_ref = refs[nin + 1]
    o_ref = refs[nin + 2]

    acc = jnp.zeros((th, out_lanes), jnp.float32)
    # One lane-shifted view per (plane, column-offset) group; taps inside a group only
    # differ by a sublane (row) offset, so the lane shift + halo join happen once.
    for (p, co), taps in groups:
        lo = co * cgrp
        cview = mains[p][0, :, lo:lo + out_lanes]
        if has_halo:
            cview = jnp.concatenate(
                [cview, halos[p][0, :, lo:lo + out_lanes]], axis=0)
        for ro, widx in taps:
            patch = cview[ro:ro + th, :].astype(jnp.float32)
            acc = acc + patch * w_ref[widx:widx + 1, :]
    y = acc + shift_ref[0:1, :]
    o_ref[0] = jnp.maximum(y, 0.0).astype(o_ref.dtype)


@functools.partial(jax.jit, static_argnames=("stride", "block_rows"))
def dwconv_bn_relu(x_nchw, weight, gamma, beta, running_mean, running_var,
                   *, stride=1, eps=1e-5, block_rows=None):
    """Forward of _DWConv (eval-mode BN). x_nchw: (N, Cin, H, W); weight: (Cout, 1, 3, 3)."""
    n, cin, h, w = x_nchw.shape
    cout = weight.shape[0]
    assert cout % cin == 0, "depthwise conv needs out_channels % dw_channels == 0"
    mult = cout // cin
    s = int(stride)

    ho = (h + 2 - 3) // s + 1
    wo = (w + 2 - 3) // s + 1

    in_isz = jnp.dtype(x_nchw.dtype).itemsize
    out_isz = in_isz

    # -------- output lane axis padded to a multiple of 128 (unmasked stores) --------
    lane_quant = 128 // math.gcd(cout, 128)
    wo_pad = _round_up(wo, lane_quant)
    out_lanes = wo_pad * cout

    # -------- space-to-depth plane geometry (independent of the row-tile size) --------
    co_max = [max([kw // s for kw in range(3) if kw % s == q], default=0)
              for q in range(s)]
    need_cols = [wo_pad + co_max[q] for q in range(s)]
    w_total = max(w + 2, s * max(need_cols))
    plane_cols = [-(-(w_total - q) // s) for q in range(s)]
    plane_lanes = [plane_cols[q] * cout for q in range(s)]
    halo_rows = 2 // s                     # extra rows a tile needs (2 if s=1, 1 if s=2)
    has_halo = halo_rows > 0

    # -------- generation- and dtype-aware row-tile sizing --------
    vmem_cap = _vmem_capacity_bytes()
    vmem_limit = min(vmem_cap // 2, 64 << 20)      # 64 MiB on v5e/v6e, 32 MiB on v7x
    budget = max(vmem_limit - (8 << 20), 8 << 20)  # headroom for internal scratch
    in_row_bytes = s * sum(plane_lanes) * in_isz

    def _live_bytes(th_):
        halo_r = 8 if has_halo else 0
        blocks = ((th_ + halo_r) * in_row_bytes            # input plane blocks
                  + th_ * out_lanes * out_isz              # output tile
                  + 10 * out_lanes * 4)                    # folded taps + shift
        inter = 3 * (th_ + 8) * out_lanes * in_isz + 2 * th_ * out_lanes * 4
        return 2 * blocks + inter                          # double-buffered blocks + temps

    if block_rows is not None:
        th = int(block_rows)
        assert th % 8 == 0 and th > 0
    else:
        th = min(256, _round_up(ho, 8))
        while th > 8 and _live_bytes(th) > budget:
            th = max(8, _round_up(th // 2, 8))
        # only shrink further if the grid would be too small to feed 2 TCs + pipeline
        while th > 8 and n * (-(-ho // th)) < 4:
            th = max(8, _round_up(th // 2, 8))
    t_tiles = -(-ho // th)
    ho_pad = t_tiles * th
    rows_needed = ho_pad + (8 if has_halo else 0)
    h_total = max(h + 2, s * rows_needed)

    # -------- layout glue: one transpose + one pad (fused under jit) --------
    x = jnp.transpose(x_nchw, (0, 2, 3, 1))                          # NHWC
    if mult > 1:
        # TODO(synk): broadcast inside the kernel instead; Fast-SCNN only uses mult == 1.
        x = jnp.repeat(x, mult, axis=-1)
    x = jnp.pad(x, ((0, 0), (1, h_total - h - 1), (1, w_total - w - 1), (0, 0)))

    # -------- fold eval-mode BatchNorm into the conv taps --------
    scale = (gamma / jnp.sqrt(running_var + eps)).astype(jnp.float32)
    shift = (beta - running_mean * scale).astype(jnp.float32)
    w_taps = jnp.transpose(weight[:, 0, :, :], (1, 2, 0)).astype(jnp.float32)  # (3,3,cout)
    w_scaled = (w_taps * scale[None, None, :]).reshape(9, cout)
    w_flat = jnp.tile(w_scaled, (1, wo_pad))                         # (9, out_lanes)
    shift_flat = jnp.tile(shift, (wo_pad,)).reshape(1, out_lanes)    # (1, out_lanes)

    planes, main_specs, halo_specs = [], [], []
    hb = th // 8
    for qr in range(s):
        for qc in range(s):
            pln = x[:, qr::s, qc::s, :]                              # (n, rows, cols, cout)
            lanes = pln.shape[2] * cout
            planes.append(pln.reshape(n, pln.shape[1], lanes))
            main_specs.append(pl.BlockSpec((1, th, lanes), lambda b, t: (b, t, 0)))
            halo_specs.append(
                pl.BlockSpec((1, 8, lanes), lambda b, t, _hb=hb: (b, (t + 1) * _hb, 0)))

    # taps grouped by (plane, column offset): one lane-shifted view per group
    tap_groups = {}
    for kh in range(3):
        for kw in range(3):
            p = (kh % s) * s + (kw % s)
            tap_groups.setdefault((p, kw // s), []).append((kh // s, kh * 3 + kw))
    groups = tuple((k, tuple(v)) for k, v in sorted(tap_groups.items()))

    kernel = functools.partial(
        _dwconv_kernel, n_planes=s * s, has_halo=has_halo, groups=groups,
        th=th, out_lanes=out_lanes, cgrp=cout)

    operands = planes + (planes if has_halo else []) + [w_flat, shift_flat]
    in_specs = main_specs + (halo_specs if has_halo else []) + [
        pl.BlockSpec((9, out_lanes), lambda b, t: (0, 0)),
        pl.BlockSpec((1, out_lanes), lambda b, t: (0, 0)),
    ]

    out_flat = pl.pallas_call(
        kernel,
        out_shape=jax.ShapeDtypeStruct((n, ho_pad, out_lanes), x_nchw.dtype),
        grid=(n, t_tiles),
        in_specs=in_specs,
        out_specs=pl.BlockSpec((1, th, out_lanes), lambda b, t: (b, t, 0)),
        compiler_params=pltpu.CompilerParams(
            dimension_semantics=("parallel", "parallel"),
            vmem_limit_bytes=vmem_limit),
    )(*operands)

    out = out_flat[:, :ho, :].reshape(n, ho, wo_pad, cout)[:, :, :wo, :]
    return jnp.transpose(out, (0, 3, 1, 2))                          # back to NCHW


def _reference(x_nchw, weight, gamma, beta, running_mean, running_var,
               *, stride=1, eps=1e-5):
    """Pure-JAX reference (lax conv) for validation."""
    cin = x_nchw.shape[1]
    x = jnp.transpose(x_nchw, (0, 2, 3, 1))
    w_hwio = jnp.transpose(weight, (2, 3, 1, 0))                     # (3,3,1,Cout)
    y = lax.conv_general_dilated(
        x, w_hwio, window_strides=(stride, stride), padding=((1, 1), (1, 1)),
        dimension_numbers=("NHWC", "HWIO", "NHWC"), feature_group_count=cin)
    scale = gamma / jnp.sqrt(running_var + eps)
    shift = beta - running_mean * scale
    y = jnp.maximum(y * scale + shift, 0.0)
    return jnp.transpose(y, (0, 3, 1, 2))


if __name__ == "__main__":
    key = jax.random.PRNGKey(0)
    k1, k2, k3, k4, k5, k6 = jax.random.split(key, 6)

    N, C, H, W = 2, 4, 16, 16          # dw_channels = out_channels = 4, stride = 1
    Cout, stride = C, 1

    x = jax.random.normal(k1, (N, C, H, W), jnp.float32)
    weight = jax.random.normal(k2, (Cout, 1, 3, 3), jnp.float32) * 0.2
    gamma = jax.random.normal(k3, (Cout,), jnp.float32) * 0.1 + 1.0
    beta = jax.random.normal(k4, (Cout,), jnp.float32) * 0.1
    running_mean = jax.random.normal(k5, (Cout,), jnp.float32) * 0.1
    running_var = jax.nn.softplus(jax.random.normal(k6, (Cout,), jnp.float32)) + 0.5

    out = dwconv_bn_relu(x, weight, gamma, beta, running_mean, running_var,
                         stride=stride)
    out = jax.block_until_ready(out)

    ref = _reference(x, weight, gamma, beta, running_mean, running_var,
                     stride=stride)
    assert out.shape == ref.shape
    assert jnp.allclose(out, ref, rtol=1e-4, atol=1e-5), \
        float(jnp.max(jnp.abs(out - ref)))

    print("KERNEL_OK")
</pallas_src>

<mosaic_0001>
module attributes {stable_mosaic.version = 11 : i64} {
  func.func @_dwconv_kernel(%arg0: i32, %arg1: i32, %arg2: memref<1x8x136xf32, #tpu.memory_space<vmem>>, %arg3: memref<1x8x136xf32, #tpu.memory_space<vmem>>, %arg4: memref<9x128xf32, #tpu.memory_space<vmem>>, %arg5: memref<1x128xf32, #tpu.memory_space<vmem>>, %arg6: memref<1x8x128xf32, #tpu.memory_space<vmem>>) attributes {dimension_semantics = [#tpu.dimension_semantics<parallel>, #tpu.dimension_semantics<parallel>], iteration_bounds = array<i64: 2, 2>, scalar_prefetch = 0 : i64, scratch_operands = 0 : i64, tpu.core_type = #tpu.core_type<tc>, window_params = [{transform_indices = @transform_0, window_bounds = array<i64: 1, 8, 136>}, {transform_indices = @transform_1, window_bounds = array<i64: 1, 8, 136>}, {pipeline_mode = #tpu.pipeline_mode<synchronous>, transform_indices = @transform_2, window_bounds = array<i64: 9, 128>}, {pipeline_mode = #tpu.pipeline_mode<synchronous>, transform_indices = @transform_3, window_bounds = array<i64: 1, 128>}, {transform_indices = @transform_4, window_bounds = array<i64: 1, 8, 128>}]} {
    %cst = arith.constant 0.000000e+00 : f32
    %0 = vector.broadcast %cst : f32 to vector<8x128xf32>
    %c0 = arith.constant 0 : index
    %c0_0 = arith.constant 0 : index
    %c0_1 = arith.constant 0 : index
    %1 = vector.load %arg2[%c0, %c0_0, %c0_1] : memref<1x8x136xf32, #tpu.memory_space<vmem>>, vector<1x8x128xf32>
    %2 = vector.shape_cast %1 : vector<1x8x128xf32> to vector<8x128xf32>
    %c0_2 = arith.constant 0 : index
    %c0_3 = arith.constant 0 : index
    %c0_4 = arith.constant 0 : index
    %3 = vector.load %arg3[%c0_2, %c0_3, %c0_4] : memref<1x8x136xf32, #tpu.memory_space<vmem>>, vector<1x8x128xf32>
    %4 = vector.shape_cast %3 : vector<1x8x128xf32> to vector<8x128xf32>
    %5 = tpu.concatenate %2, %4 in 0 : vector<8x128xf32>, vector<8x128xf32> -> vector<16x128xf32>
    %6 = vector.extract_strided_slice %5 {offsets = [0, 0], sizes = [8, 128], strides = [1, 1]} : vector<16x128xf32> to vector<8x128xf32>
    %c0_5 = arith.constant 0 : index
    %c0_6 = arith.constant 0 : index
    %7 = vector.load %arg4[%c0_5, %c0_6] : memref<9x128xf32, #tpu.memory_space<vmem>>, vector<1x128xf32>
    %8 = vector.broadcast %7 : vector<1x128xf32> to vector<8x128xf32>
    %9 = arith.mulf %6, %8 : vector<8x128xf32>
    %10 = arith.addf %0, %9 : vector<8x128xf32>
    %11 = vector.extract_strided_slice %5 {offsets = [1, 0], sizes = [8, 128], strides = [1, 1]} : vector<16x128xf32> to vector<8x128xf32>
    %c3 = arith.constant 3 : index
    %c0_7 = arith.constant 0 : index
    %12 = vector.load %arg4[%c3, %c0_7] : memref<9x128xf32, #tpu.memory_space<vmem>>, vector<1x128xf32>
    %13 = vector.broadcast %12 : vector<1x128xf32> to vector<8x128xf32>
    %14 = arith.mulf %11, %13 : vector<8x128xf32>
    %15 = arith.addf %10, %14 : vector<8x128xf32>
    %16 = vector.extract_strided_slice %5 {offsets = [2, 0], sizes = [8, 128], strides = [1, 1]} : vector<16x128xf32> to vector<8x128xf32>
    %c6 = arith.constant 6 : index
    %c0_8 = arith.constant 0 : index
    %17 = vector.load %arg4[%c6, %c0_8] : memref<9x128xf32, #tpu.memory_space<vmem>>, vector<1x128xf32>
    %18 = vector.broadcast %17 : vector<1x128xf32> to vector<8x128xf32>
    %19 = arith.mulf %16, %18 : vector<8x128xf32>
    %20 = arith.addf %15, %19 : vector<8x128xf32>
    %c0_9 = arith.constant 0 : index
    %c0_10 = arith.constant 0 : index
    %c4 = arith.constant 4 : index
    %21 = vector.load %arg2[%c0_9, %c0_10, %c4] : memref<1x8x136xf32, #tpu.memory_space<vmem>>, vector<1x8x128xf32>
    %22 = vector.shape_cast %21 : vector<1x8x128xf32> to vector<8x128xf32>
    %c0_11 = arith.constant 0 : index
    %c0_12 = arith.constant 0 : index
    %c4_13 = arith.constant 4 : index
    %23 = vector.load %arg3[%c0_11, %c0_12, %c4_13] : memref<1x8x136xf32, #tpu.memory_space<vmem>>, vector<1x8x128xf32>
    %24 = vector.shape_cast %23 : vector<1x8x128xf32> to vector<8x128xf32>
    %25 = tpu.concatenate %22, %24 in 0 : vector<8x128xf32>, vector<8x128xf32> -> vector<16x128xf32>
    %26 = vector.extract_strided_slice %25 {offsets = [0, 0], sizes = [8, 128], strides = [1, 1]} : vector<16x128xf32> to vector<8x128xf32>
    %c1 = arith.constant 1 : index
    %c0_14 = arith.constant 0 : index
    %27 = vector.load %arg4[%c1, %c0_14] : memref<9x128xf32, #tpu.memory_space<vmem>>, vector<1x128xf32>
    %28 = vector.broadcast %27 : vector<1x128xf32> to vector<8x128xf32>
    %29 = arith.mulf %26, %28 : vector<8x128xf32>
    %30 = arith.addf %20, %29 : vector<8x128xf32>
    %31 = vector.extract_strided_slice %25 {offsets = [1, 0], sizes = [8, 128], strides = [1, 1]} : vector<16x128xf32> to vector<8x128xf32>
    %c4_15 = arith.constant 4 : index
    %c0_16 = arith.constant 0 : index
    %32 = vector.load %arg4[%c4_15, %c0_16] : memref<9x128xf32, #tpu.memory_space<vmem>>, vector<1x128xf32>
    %33 = vector.broadcast %32 : vector<1x128xf32> to vector<8x128xf32>
    %34 = arith.mulf %31, %33 : vector<8x128xf32>
    %35 = arith.addf %30, %34 : vector<8x128xf32>
    %36 = vector.extract_strided_slice %25 {offsets = [2, 0], sizes = [8, 128], strides = [1, 1]} : vector<16x128xf32> to vector<8x128xf32>
    %c7 = arith.constant 7 : index
    %c0_17 = arith.constant 0 : index
    %37 = vector.load %arg4[%c7, %c0_17] : memref<9x128xf32, #tpu.memory_space<vmem>>, vector<1x128xf32>
    %38 = vector.broadcast %37 : vector<1x128xf32> to vector<8x128xf32>
    %39 = arith.mulf %36, %38 : vector<8x128xf32>
    %40 = arith.addf %35, %39 : vector<8x128xf32>
    %c0_18 = arith.constant 0 : index
    %c0_19 = arith.constant 0 : index
    %c8 = arith.constant 8 : index
    %41 = vector.load %arg2[%c0_18, %c0_19, %c8] : memref<1x8x136xf32, #tpu.memory_space<vmem>>, vector<1x8x128xf32>
    %42 = vector.shape_cast %41 : vector<1x8x128xf32> to vector<8x128xf32>
    %c0_20 = arith.constant 0 : index
    %c0_21 = arith.constant 0 : index
    %c8_22 = arith.constant 8 : index
    %43 = vector.load %arg3[%c0_20, %c0_21, %c8_22] : memref<1x8x136xf32, #tpu.memory_space<vmem>>, vector<1x8x128xf32>
    %44 = vector.shape_cast %43 : vector<1x8x128xf32> to vector<8x128xf32>
    %45 = tpu.concatenate %42, %44 in 0 : vector<8x128xf32>, vector<8x128xf32> -> vector<16x128xf32>
    %46 = vector.extract_strided_slice %45 {offsets = [0, 0], sizes = [8, 128], strides = [1, 1]} : vector<16x128xf32> to vector<8x128xf32>
    %c2 = arith.constant 2 : index
    %c0_23 = arith.constant 0 : index
    %47 = vector.load %arg4[%c2, %c0_23] : memref<9x128xf32, #tpu.memory_space<vmem>>, vector<1x128xf32>
    %48 = vector.broadcast %47 : vector<1x128xf32> to vector<8x128xf32>
    %49 = arith.mulf %46, %48 : vector<8x128xf32>
    %50 = arith.addf %40, %49 : vector<8x128xf32>
    %51 = vector.extract_strided_slice %45 {offsets = [1, 0], sizes = [8, 128], strides = [1, 1]} : vector<16x128xf32> to vector<8x128xf32>
    %c5 = arith.constant 5 : index
    %c0_24 = arith.constant 0 : index
    %52 = vector.load %arg4[%c5, %c0_24] : memref<9x128xf32, #tpu.memory_space<vmem>>, vector<1x128xf32>
    %53 = vector.broadcast %52 : vector<1x128xf32> to vector<8x128xf32>
    %54 = arith.mulf %51, %53 : vector<8x128xf32>
    %55 = arith.addf %50, %54 : vector<8x128xf32>
    %56 = vector.extract_strided_slice %45 {offsets = [2, 0], sizes = [8, 128], strides = [1, 1]} : vector<16x128xf32> to vector<8x128xf32>
    %c8_25 = arith.constant 8 : index
    %c0_26 = arith.constant 0 : index
    %57 = vector.load %arg4[%c8_25, %c0_26] : memref<9x128xf32, #tpu.memory_space<vmem>>, vector<1x128xf32>
    %58 = vector.broadcast %57 : vector<1x128xf32> to vector<8x128xf32>
    %59 = arith.mulf %56, %58 : vector<8x128xf32>
    %60 = arith.addf %55, %59 : vector<8x128xf32>
    %c0_27 = arith.constant 0 : index
    %c0_28 = arith.constant 0 : index
    %61 = vector.load %arg5[%c0_27, %c0_28] : memref<1x128xf32, #tpu.memory_space<vmem>>, vector<1x128xf32>
    %62 = vector.broadcast %61 : vector<1x128xf32> to vector<8x128xf32>
    %63 = arith.addf %60, %62 : vector<8x128xf32>
    %cst_29 = arith.constant 0.000000e+00 : f32
    %64 = vector.broadcast %cst_29 : f32 to vector<8x128xf32>
    %65 = arith.maximumf %63, %64 : vector<8x128xf32>
    %c0_30 = arith.constant 0 : index
    %c0_31 = arith.constant 0 : index
    %c0_32 = arith.constant 0 : index
    %66 = vector.load %arg6[%c0_30, %c0_31, %c0_32] : memref<1x8x128xf32, #tpu.memory_space<vmem>>, vector<1x8x128xf32>
    %67 = vector.shape_cast %66 : vector<1x8x128xf32> to vector<8x128xf32>
    %68 = vector.shape_cast %65 : vector<8x128xf32> to vector<1x8x128xf32>
    tpu.vector_store %arg6[%c0_30, %c0_31, %c0_32], %68 {strides = array<i32>} : memref<1x8x128xf32, #tpu.memory_space<vmem>>, vector<1x8x128xf32>,
    return
  }
  func.func @transform_0(%arg0: i32, %arg1: i32) -> (i32, i32, i32) {
    %c0_i32 = arith.constant 0 : i32
    %c0_i32_0 = arith.constant 0 : i32
    return %arg0, %arg1, %c0_i32 : i32, i32, i32
  }
  func.func @transform_1(%arg0: i32, %arg1: i32) -> (i32, i32, i32) {
    %c1_i32 = arith.constant 1 : i32
    %0 = arith.addi %arg1, %c1_i32 : i32
    %c1_i32_0 = arith.constant 1 : i32
    %1 = arith.muli %0, %c1_i32_0 : i32
    %c0_i32 = arith.constant 0 : i32
    %c0_i32_1 = arith.constant 0 : i32
    return %arg0, %1, %c0_i32 : i32, i32, i32
  }
  func.func @transform_2(%arg0: i32, %arg1: i32) -> (i32, i32) {
    %c0_i32 = arith.constant 0 : i32
    %c0_i32_0 = arith.constant 0 : i32
    %c0_i32_1 = arith.constant 0 : i32
    return %c0_i32, %c0_i32_0 : i32, i32
  }
  func.func @transform_3(%arg0: i32, %arg1: i32) -> (i32, i32) {
    %c0_i32 = arith.constant 0 : i32
    %c0_i32_0 = arith.constant 0 : i32
    %c0_i32_1 = arith.constant 0 : i32
    return %c0_i32, %c0_i32_0 : i32, i32
  }
  func.func @transform_4(%arg0: i32, %arg1: i32) -> (i32, i32, i32) {
    %c0_i32 = arith.constant 0 : i32
    %c0_i32_0 = arith.constant 0 : i32
    return %arg0, %arg1, %c0_i32 : i32, i32, i32
  }
}

</mosaic_0001>

<bundles_post_ra>
// kernel: tile.16
= control target key start
LH: loop header
LB: loop body
LE: loop exit
PB: predicated region body
PF: predicated region fallthrough
CT: control target
= control target key end

     0   :  { %s40_s0 = inlined_call_operand.vmem [shape: f32[4], index: 0, kind: input, shape index: {}]   ;;  %s41_s1 = inlined_call_operand.vmem [shape: f32[32,4], index: 1, kind: output, shape index: {}]  }
   0x1   :  { %v4_v0 = vld [vmem:[%s40_s0] ss:$0 sm:$0xff] }
   0x2   :  { %5 = vst [vmem:[%s41_s1] sm:$0xff] %v4_v0  ;;  %12 = vst [vmem:[%s41_s1 + $0x8] sm:$0xff] %v4_v0 }
   0x3   :  { %13 = vst [vmem:[%s41_s1 + $0x10] sm:$0xff] %v4_v0  ;;  %14 = vst [vmem:[%s41_s1 + $0x18] sm:$0xff] %v4_v0 }

// kernel: tile.17
= control target key start
LH: loop header
LB: loop body
LE: loop exit
PB: predicated region body
PF: predicated region fallthrough
CT: control target
= control target key end

     0   :  { %s259_s10 = smov 124   ;;  %s260_s11 = smov 116   ;;  %vm3_vm0 = vcmask 31744   ;;  %vm9_vm1 = vcmask 1048544   ;;  %vm15_vm2 = vcmask 1015744   ;;  %vm21_vm3 = vcmask 982944   ;;  %s399_s0 = inlined_call_operand.vmem [shape: f32[32,4], index: 0, kind: input, shape index: {}]   ;;  %s400_s1 = inlined_call_operand.vmem [shape: f32[1,128], index: 1, kind: output, shape index: {}]  }
   0x1   :  { %v197_v0 = vld [vmem:[%s399_s0 + $0x1f] sm:$0x1]   ;;  %v199_v1 = vld [vmem:[%s399_s0 + $0x1d] sm:$0x1]   ;;  %v198_v2 = vld [vmem:[%s399_s0 + $0x1e] sm:$0x1]  }
   0x2   :  { %7 = vrot.lane.b32.xlu0 %v197_v0, %s259_s10  ;;  %19 = vrot.lane.b32.xlu1 %v199_v1, %s260_s11  ;;  %v200_v3 = vld [vmem:[%s399_s0 + $0x1c] sm:$0x1]   ;;  %s261_s16 = smov 120   ;;  %s262_s17 = smov 112   ;;  %v201_v4 = vld [vmem:[%s399_s0 + $0x1b] sm:$0x1]  }
   0x3   :  { %v202_v5 = vld [vmem:[%s399_s0 + $0x1a] sm:$0x1]   ;;  %s263_s22 = smov 108   ;;  %s264_s23 = smov 104   ;;  %v203_v6 = vld [vmem:[%s399_s0 + $0x19] sm:$0x1]  }
   0x4   :  { %v204_v7 = vld [vmem:[%s399_s0 + $0x18] sm:$0x1]   ;;  %s265_s28 = smov 100   ;;  %s266_s29 = smov 96   ;;  %v205_v8 = vld [vmem:[%s399_s0 + $0x17] sm:$0x1]  }
   0x5   :  { %v206_v9 = vld [vmem:[%s399_s0 + $0x16] sm:$0x1]   ;;  %v2_v10 = vld [vmem:[%s399_s0] sm:$0x1]   ;;  %s267_s7 = smov 92   ;;  %s268_s8 = smov 88  }
   0x6   :  { %13 = vrot.lane.b32.xlu0 %v198_v2, %s261_s16  ;;  %25 = vrot.lane.b32.xlu1 %v200_v3, %s262_s17  ;;  %4 = vst.msk [vmem:[#allocation0] sm:$0x1] %vm3_vm0, %v2_v10   ;;  %v207_v11 = vld [vmem:[%s399_s0 + $0x15] sm:$0x1]   ;;  %v208_v12 = vld [vmem:[%s399_s0 + $0x14] sm:$0x1]  }
   0x7   :  { %s269_s13 = smov 84   ;;  %s270_s14 = smov 80   ;;  %v209_v13 = vld [vmem:[%s399_s0 + $0x13] sm:$0x1]   ;;  %v210_v14 = vld [vmem:[%s399_s0 + $0x12] sm:$0x1]  }
   0x8   :  { %s271_s19 = smov 76   ;;  %s272_s20 = smov 72   ;;  %v211_v15 = vld [vmem:[%s399_s0 + $0x11] sm:$0x1]   ;;  %v212_v16 = vld [vmem:[%s399_s0 + $0x10] sm:$0x1]  }
   0x9   :  { %s273_s25 = smov 68   ;;  %s274_s26 = smov 64   ;;  %v213_v17 = vld [vmem:[%s399_s0 + $0xf] sm:$0x1]   ;;  %v214_v18 = vld [vmem:[%s399_s0 + $0xe] sm:$0x1]  }
   0xa   :  { %31 = vrot.lane.b32.xlu0 %v201_v4, %s263_s22  ;;  %37 = vrot.lane.b32.xlu1 %v202_v5, %s264_s23  ;;  %s275_s2 = smov 60   ;;  %s276_s3 = smov 56   ;;  %v215_v19 = vld [vmem:[%s399_s0 + $0xd] sm:$0x1]   ;;  %v216_v20 = vld [vmem:[%s399_s0 + $0xc] sm:$0x1]  }
   0xb   :  { %s278_s9 = smov 48   ;;  %v217_v21 = vld [vmem:[%s399_s0 + $0xb] sm:$0x1]   ;;  %v218_v22 = vld [vmem:[%s399_s0 + $0xa] sm:$0x1]   ;;  %s280_s15 = smov 40  }
   0xc   :  { %v219_v23 = vld [vmem:[%s399_s0 + $0x9] sm:$0x1]   ;;  %v220_v24 = vld [vmem:[%s399_s0 + $0x8] sm:$0x1]   ;;  %s282_s21 = smov 32   ;;  %s284_s27 = smov 24  }
   0xd   :  { %v221_v25 = vld [vmem:[%s399_s0 + $0x7] sm:$0x1]   ;;  %v222_v26 = vld [vmem:[%s399_s0 + $0x6] sm:$0x1]   ;;  %v223_v27 = vld [vmem:[%s399_s0 + $0x5] sm:$0x1]  }
   0xe   :  { %43 = vrot.lane.b32.xlu0 %v203_v6, %s265_s28  ;;  %49 = vrot.lane.b32.xlu1 %v204_v7, %s266_s29  ;;  %v224_v28 = vld [vmem:[%s399_s0 + $0x4] sm:$0x1]   ;;  %s286_s4 = smov 16   ;;  %v225_v29 = vld [vmem:[%s399_s0 + $0x3] sm:$0x1]   ;;  %s288_s10 = smov 8  }
   0xf   :  { %v226_v30 = vld [vmem:[%s399_s0 + $0x2] sm:$0x1]   ;;  %v227_v31 = vld [vmem:[%s399_s0 + $0x1] sm:$0x1]   ;;  %s289_s0 = smov 4   ;;  %vm27_vm4 = vcmask 950144  }
  0x10   :  { %vm33_vm5 = vcmask 917344   ;;  %vm39_vm6 = vcmask 884544   ;;  %vm45_vm7 = vcmask 851744   ;;  %vm51_vm8 = vcmask 818944  }
  0x11   :  { %vm57_vm9 = vcmask 786144   ;;  %vm63_vm10 = vcmask 753344   ;;  %vm69_vm11 = vcmask 720544   ;;  %vm75_vm12 = vcmask 687744  }
  0x12   :  { %55 = vrot.lane.b32.xlu0 %v205_v8, %s267_s7  ;;  %61 = vrot.lane.b32.xlu1 %v206_v9, %s268_s8  ;;  %s277_s8 = smov 52   ;;  %vm81_vm13 = vcmask 654944   ;;  %vm87_vm14 = vcmask 622144   ;;  %vm93_vm15 = vcmask 589344   ;;  %vm99_vm0 = vcmask 556544  }
  0x16   :  { %67 = vrot.lane.b32.xlu0 %v207_v11, %s269_s13  ;;  %73 = vrot.lane.b32.xlu1 %v208_v12, %s270_s14  ;;  %s279_s14 = smov 44  }
  0x1a   :  { %79 = vrot.lane.b32.xlu0 %v209_v13, %s271_s19  ;;  %85 = vrot.lane.b32.xlu1 %v210_v14, %s272_s20  ;;  %s281_s20 = smov 36  }
  0x1e   :  { %91 = vrot.lane.b32.xlu0 %v211_v15, %s273_s25  ;;  %97 = vrot.lane.b32.xlu1 %v212_v16, %s274_s26  ;;  %s283_s26 = smov 28  }
  0x22   :  { %103 = vrot.lane.b32.xlu0 %v213_v17, %s275_s2  ;;  %109 = vrot.lane.b32.xlu1 %v214_v18, %s276_s3  ;;  %s285_s3 = smov 20  }
  0x26   :  { %115 = vrot.lane.b32.xlu0 %v215_v19, %s277_s8  ;;  %121 = vrot.lane.b32.xlu1 %v216_v20, %s278_s9  ;;  %s287_s9 = smov 12  }
  0x2a   :  { %127 = vrot.lane.b32.xlu0 %v217_v21, %s279_s14  ;;  %133 = vrot.lane.b32.xlu1 %v218_v22, %s280_s15 }
  0x2e   :  { %139 = vrot.lane.b32.xlu0 %v219_v23, %s281_s20  ;;  %145 = vrot.lane.b32.xlu1 %v220_v24, %s282_s21 }
  0x32   :  { %151 = vrot.lane.b32.xlu0 %v221_v25, %s283_s26  ;;  %157 = vrot.lane.b32.xlu1 %v222_v26, %s284_s27 }
  0x36   :  { %163 = vrot.lane.b32.xlu0 %v223_v27, %s285_s3  ;;  %169 = vrot.lane.b32.xlu1 %v224_v28, %s286_s4 }
  0x3a   :  { %175 = vrot.lane.b32.xlu0 %v225_v29, %s287_s9  ;;  %181 = vrot.lane.b32.xlu1 %v226_v30, %s288_s10 }
  0x3e   :  { %187 = vrot.lane.b32.xlu0 %v227_v31, %s289_s0 }
  0x74   :  { %v8_v32 = vpop.permute.xlu0 %7   ;;  %v20_v33 = vpop.permute.xlu1 %19  }
  0x75   :  { %10 = vst.msk [vmem:[#allocation0] sm:$0x1] %vm9_vm1, %v8_v32   ;;  %vm105_vm1 = vcmask 523744  }
  0x78   :  { %v14_v34 = vpop.permute.xlu0 %13   ;;  %v26_v35 = vpop.permute.xlu1 %25  }
  0x79   :  { %16 = vst.msk [vmem:[#allocation0] sm:$0x1] %vm15_vm2, %v14_v34   ;;  %vm111_vm2 = vcmask 490944  }
  0x7a   :  { %22 = vst.msk [vmem:[#allocation0] sm:$0x1] %vm21_vm3, %v20_v33   ;;  %vm117_vm3 = vcmask 458144  }
  0x7b   :  { %28 = vst.msk [vmem:[#allocation0] sm:$0x1] %vm27_vm4, %v26_v35   ;;  %vm123_vm4 = vcmask 425344  }
  0x7c   :  { %v32_v36 = vpop.permute.xlu0 %31   ;;  %v38_v37 = vpop.permute.xlu1 %37  }
  0x7d   :  { %34 = vst.msk [vmem:[#allocation0] sm:$0x1] %vm33_vm5, %v32_v36   ;;  %vm129_vm5 = vcmask 392544  }
  0x7e   :  { %40 = vst.msk [vmem:[#allocation0] sm:$0x1] %vm39_vm6, %v38_v37   ;;  %vm135_vm6 = vcmask 359744  }
  0x80   :  { %v44_v38 = vpop.permute.xlu0 %43   ;;  %v50_v39 = vpop.permute.xlu1 %49  }
  0x81   :  { %46 = vst.msk [vmem:[#allocation0] sm:$0x1] %vm45_vm7, %v44_v38   ;;  %vm141_vm7 = vcmask 326944  }
  0x82   :  { %52 = vst.msk [vmem:[#allocation0] sm:$0x1] %vm51_vm8, %v50_v39   ;;  %vm147_vm8 = vcmask 294144  }
  0x84   :  { %v56_v40 = vpop.permute.xlu0 %55   ;;  %v62_v41 = vpop.permute.xlu1 %61  }
  0x85   :  { %58 = vst.msk [vmem:[#allocation0] sm:$0x1] %vm57_vm9, %v56_v40   ;;  %vm153_vm9 = vcmask 261344  }
  0x86   :  { %64 = vst.msk [vmem:[#allocation0] sm:$0x1] %vm63_vm10, %v62_v41   ;;  %vm159_vm10 = vcmask 228544  }
  0x88   :  { %v68_v42 = vpop.permute.xlu0 %67   ;;  %v74_v43 = vpop.permute.xlu1 %73  }
  0x89   :  { %70 = vst.msk [vmem:[#allocation0] sm:$0x1] %vm69_vm11, %v68_v42   ;;  %vm165_vm11 = vcmask 195744  }
  0x8a   :  { %76 = vst.msk [vmem:[#allocation0] sm:$0x1] %vm75_vm12, %v74_v43   ;;  %vm171_vm12 = vcmask 162944  }
  0x8c   :  { %v80_v44 = vpop.permute.xlu0 %79   ;;  %v86_v45 = vpop.permute.xlu1 %85  }
  0x8d   :  { %82 = vst.msk [vmem:[#allocation0] sm:$0x1] %vm81_vm13, %v80_v44   ;;  %vm177_vm13 = vcmask 130144  }
  0x8e   :  { %88 = vst.msk [vmem:[#allocation0] sm:$0x1] %vm87_vm14, %v86_v45   ;;  %vm183_vm14 = vcmask 97344  }
  0x90   :  { %v92_v46 = vpop.permute.xlu0 %91   ;;  %v98_v47 = vpop.permute.xlu1 %97  }
  0x91   :  { %94 = vst.msk [vmem:[#allocation0] sm:$0x1] %vm93_vm15, %v92_v46   ;;  %vm189_vm15 = vcmask 64544  }
  0x92   :  { %100 = vst.msk [vmem:[#allocation0] sm:$0x1] %vm99_vm0, %v98_v47  }
  0x94   :  { %v104_v48 = vpop.permute.xlu0 %103   ;;  %v110_v49 = vpop.permute.xlu1 %109  }
  0x95   :  { %106 = vst.msk [vmem:[#allocation0] sm:$0x1] %vm105_vm1, %v104_v48  }
  0x96   :  { %112 = vst.msk [vmem:[#allocation0] sm:$0x1] %vm111_vm2, %v110_v49  }
  0x98   :  { %v116_v50 = vpop.permute.xlu0 %115   ;;  %v122_v51 = vpop.permute.xlu1 %121  }
  0x99   :  { %118 = vst.msk [vmem:[#allocation0] sm:$0x1] %vm117_vm3, %v116_v50  }
  0x9a   :  { %124 = vst.msk [vmem:[#allocation0] sm:$0x1] %vm123_vm4, %v122_v51  }
  0x9c   :  { %v128_v52 = vpop.permute.xlu0 %127   ;;  %v134_v53 = vpop.permute.xlu1 %133  }
  0x9d   :  { %130 = vst.msk [vmem:[#allocation0] sm:$0x1] %vm129_vm5, %v128_v52  }
  0x9e   :  { %136 = vst.msk [vmem:[#allocation0] sm:$0x1] %vm135_vm6, %v134_v53  }
  0xa0   :  { %v140_v54 = vpop.permute.xlu0 %139   ;;  %v146_v55 = vpop.permute.xlu1 %145  }
  0xa1   :  { %142 = vst.msk [vmem:[#allocation0] sm:$0x1] %vm141_vm7, %v140_v54  }
  0xa2   :  { %148 = vst.msk [vmem:[#allocation0] sm:$0x1] %vm147_vm8, %v146_v55  }
  0xa4   :  { %v152_v56 = vpop.permute.xlu0 %151   ;;  %v158_v57 = vpop.permute.xlu1 %157  }
  0xa5   :  { %154 = vst.msk [vmem:[#allocation0] sm:$0x1] %vm153_vm9, %v152_v56  }
  0xa6   :  { %160 = vst.msk [vmem:[#allocation0] sm:$0x1] %vm159_vm10, %v158_v57  }
  0xa8   :  { %v164_v58 = vpop.permute.xlu0 %163   ;;  %v170_v59 = vpop.permute.xlu1 %169  }
  0xa9   :  { %166 = vst.msk [vmem:[#allocation0] sm:$0x1] %vm165_vm11, %v164_v58  }
  0xaa   :  { %172 = vst.msk [vmem:[#allocation0] sm:$0x1] %vm171_vm12, %v170_v59  }
  0xac   :  { %v176_v60 = vpop.permute.xlu0 %175   ;;  %v182_v61 = vpop.permute.xlu1 %181  }
  0xad   :  { %178 = vst.msk [vmem:[#allocation0] sm:$0x1] %vm177_vm13, %v176_v60  }
  0xae   :  { %184 = vst.msk [vmem:[#allocation0] sm:$0x1] %vm183_vm14, %v182_v61  }
  0xb0   :  { %v188_v62 = vpop.permute.xlu0 %187  }
  0xb1   :  { %190 = vst.msk [vmem:[#allocation0] sm:$0x1] %vm189_vm15, %v188_v62  }
  0xb8   :  { %v194_v63 = vld [vmem:[#allocation0] sm:$0x1] }
  0xb9   :  { %196 = vst [vmem:[%s400_s1] sm:$0x1] %v194_v63 }

// kernel: dwconv_bn_relu.1
= control target key start
LH: loop header
LB: loop body
LE: loop exit
PB: predicated region body
PF: predicated region fallthrough
CT: control target
= control target key end

     0   :  { %s733_s15 = smov 0   ;;  %s735_s16 = smov 0   ;;  %s879_s0 = inlined_call_operand.vmem [shape: f32[2,24,136], index: 0, kind: input, shape index: {}, may-alias: {0,1}]   ;;  %s880_s1 = inlined_call_operand.vmem [shape: f32[2,24,136], index: 1, kind: input, shape index: {}, may-alias: {0,1}]   ;;  %s881_s2 = inlined_call_operand.vmem [shape: f32[9,128], index: 2, kind: input, shape index: {}]   ;;  %s882_s3 = inlined_call_operand.vmem [shape: f32[1,128], index: 3, kind: input, shape index: {}]   ;;  %s883_s4 = inlined_call_operand.vmem [shape: f32[2,16,128], index: 4, kind: output, shape index: {}]  }
   0x1   :  { %s737_s17 = smov 0   ;;  %s739_s18 = smov 0  }
   0x2   :  { %s741_s19 = smov 0  }
   0x3 LB: > { %s23_s20 = sadd.s32 1, %s694_s17  ;;  %s26_s21 = sadd.s32 1, %s698_s18  ;;  %s702_s19 = sphi %s741_s19, %s14_s19   ;;  %s698_s18 = sphi %s739_s18, %s887_s18   ;;  %s694_s17 = sphi %s737_s17, %s886_s17   ;;  %s690_s16 = sphi %s735_s16, %s885_s16   ;;  %s686_s15 = sphi %s733_s15, %s884_s15  }
   0x4   : > { %p24_p0 = scmp.ge.s32.totalorder %s23_s20, 2  ;;  %p600_p1 = scmp.ge.s32.totalorder %s702_s19, 1 }
   0x5   : > { %p202_p2 = scmp.lt.s32.totalorder %s702_s19, 5 }
   0x6   : > { %s889_s20 = smov (%p24_p0, %s23_s20), 0  ;;  %s891_s21 = smov (!%p24_p0, %s26_s21), %s698_s18 }
   0x7   : > { %p203_p3 = pnand %p600_p1, %p202_p2  ;;  %p28_p4 = scmp.ge.s32.totalorder %s891_s21, 2 }
   0x8   : > { %v611_v0 = vld [vmem:[%s881_s2 + $0x4] ss:$0 sm:$0xff] (!%p203_p3)  ;;  %s704_s24 = smov (!%p203_p3), 4   ;;  %v612_v1 = vld [vmem:[%s881_s2 + $0x7] ss:$0 sm:$0xff] (!%p203_p3)  ;;  %s705_s7 = smov (!%p203_p3), 8  }
   0x9   : > { %s893_s21 = smov (%p28_p4, %s891_s21), 0  ;;  %206 = sbr.rel (%p203_p3) target bundleno = 274 (0x112), region = 36 }
   0xa   : > { %341 = vrot.lane.b32.xlu0 (!%p203_p3), %v611_v0, %s704_s24  ;;  %v610_v2 = vld [vmem:[%s881_s2 + $0x1] ss:$0 sm:$0xff] (!%p203_p3)  ;;  %371 = vrot.lane.b32.xlu1 (!%p203_p3), %v612_v1, %s704_s24  ;;  %v614_v3 = vld [vmem:[%s881_s2 + $0x5] ss:$0 sm:$0xff] (!%p203_p3)  ;;  %s254_s10 = sadd.s32 (!%p203_p3), 1, %s686_s15  ;;  %p245_p5 = scmp.lt.s32.totalorder (!%p203_p3), %s690_s16, 1 }
   0xb   : > { %v613_v4 = vld [vmem:[%s881_s2 + $0x2] ss:$0 sm:$0xff] (!%p203_p3)  ;;  %v615_v5 = vld [vmem:[%s881_s2 + $0x8] ss:$0 sm:$0xff] (!%p203_p3)  ;;  %p247_p6 = scmp.lt.s32.totalorder (!%p203_p3), %s686_s15, 2  ;;  %p257_p7 = scmp.lt.s32.totalorder (!%p203_p3), %s254_s10, 2 }
   0xc   : > { %v608_v8 = vld [vmem:[%s881_s2 + $0x3] ss:$0 sm:$0xff] (!%p203_p3)  ;;  %v609_v11 = vld [vmem:[%s881_s2 + $0x6] ss:$0 sm:$0xff] (!%p203_p3)  ;;  %v607_v12 = vld [vmem:[%s881_s2] ss:$0 sm:$0xff] (!%p203_p3) }
   0xd   : > { %vm291_vm0 = vcmask (!%p203_p3), 1046528   ;;  %vm306_vm1 = vcmask (!%p203_p3), 1045504   ;;  %vm331_vm2 = vcmask (!%p203_p3), 1014784   ;;  %p267_p8 = scmp.lt.s32.totalorder (!%p203_p3), %s686_s15, 1  ;;  %vm412_vm3 = vcmask (!%p203_p3), 982016  }
   0xe   : > { %320 = vrot.lane.b32.xlu0 (!%p203_p3), %v610_v2, %s704_s24  ;;  %422 = vrot.lane.b32.xlu1 (!%p203_p3), %v614_v3, %s705_s7 }
  0x10   : > { %s895_s16 = smov (!%p245_p5, %s690_s16), 1  ;;  %s897_s10 = smov (!%p257_p7, %s254_s10), 2 }
  0x11   : > { %s248_s11 = scalar_select %p247_p6, %s686_s15, 2 }
  0x12   : > { %401 = vrot.lane.b32.xlu0 %v613_v4, %s705_s7  ;;  %452 = vrot.lane.b32.xlu1 %v615_v5, %s705_s7  ;;  %s619_s12 = smul.u32 6, %s895_s16  ;;  %s603_s14 = sshll.u32 %s897_s10, 1 }
  0x13   : > { %s601_s13 = sshll.u32 %s248_s11, 1  ;;  %s899_s15 = smov (!%p267_p8, %s686_s15), 1 }
  0x14   : > { %s251_s22 = sadd.s32 %s619_s12, %s601_s13  ;;  %s261_s23 = sadd.s32 %s619_s12, %s603_s14 }
  0x15   : > { %s602_s24 = sshll.u32 %s251_s22, 3  ;;  %s604_s25 = sshll.u32 %s261_s23, 3 }
  0x16   : > { %s253_s28 = scalar_lea.vmem %s879_s0, %s602_s24  ;;  %s263_s5 = scalar_lea.vmem %s880_s1, %s604_s25 }
  0x17   : > { %v799_v6 = vld [vmem:[%s253_s28] sm:$0xff]  ;;  %v312_v25 = vld [vmem:[%s253_s28 + $0x8] sm:$0xff]  ;;  %s706_s12 = smov 124   ;;  %s707_s13 = smov 120  }
  0x18   : > { %v801_v7 = vld [vmem:[%s263_s5] sm:$0xff]  ;;  %v287_v10 = vmul.f32 %v608_v8, %v799_v6  ;;  %v302_v16 = vmul.f32 %v609_v11, %v799_v6  ;;  %v280_v17 = vmul.f32 %v607_v12, %v799_v6  ;;  %v313_v26 = vld [vmem:[%s263_s5 + $0x8] sm:$0xff]  ;;  %s605_s14 = sshll.u32 %s895_s16, 1 }
  0x19   : > { %v288_v9 = vmul.f32 %v608_v8, %v801_v7  ;;  %v303_v14 = vmul.f32 %v609_v11, %v801_v7  ;;  %s270_s22 = sadd.s32 %s605_s14, %s899_s15 }
  0x1a   : > { %v292_v15 = vrot.slane %v287_v10, 1  ;;  %v307_v20 = vrot.slane %v302_v16, 2  ;;  %s606_s25 = sshll.u32 %s270_s22, 3 }
  0x1b   : > { %v293_v13 = vrot.slane %v288_v9, 1  ;;  %v308_v18 = vrot.slane %v303_v14, 2  ;;  %s272_s28 = scalar_lea.vmem %s883_s4, %s606_s25 }
  0x1d   : > { %v294_v19 = vsel %vm291_vm0, %v292_v15, %v293_v13  ;;  %v309_v22 = vsel %vm306_vm1, %v307_v20, %v308_v18 }
  0x1e   : > { %v296_v21 = vadd.f32 %v294_v19, %v280_v17 }
  0x20   : > { %v819_v23 = vadd.f32 %v309_v22, %v296_v21 }
  0x7c   : > { %v342_v24 = vpop.permute.xlu0 %341  ;;  %v372_v27 = vpop.permute.xlu1 %371 }
  0x7d   : > { %v344_v28 = vmul.f32 %v342_v24, %v799_v6  ;;  %v345_v29 = vmul.f32 %v342_v24, %v312_v25  ;;  %v347_v30 = vmul.f32 %v342_v24, %v313_v26  ;;  %v346_v32 = vmul.f32 %v342_v24, %v801_v7 }
  0x7e   : > { %v375_v35 = vmul.f32 %v372_v27, %v312_v25  ;;  %v374_v36 = vmul.f32 %v372_v27, %v799_v6  ;;  %v376_v37 = vmul.f32 %v372_v27, %v801_v7  ;;  %v377_v38 = vmul.f32 %v372_v27, %v313_v26 }
  0x7f   : > { %v355_v41 = vrot.slane %v345_v29, 1  ;;  %v356_v42 = vrot.slane %v347_v30, 1  ;;  %v352_v43 = vrot.slane %v344_v28, 1  ;;  %v353_v46 = vrot.slane %v346_v32, 1 }
  0x80   : > { %v321_v31 = vpop.permute.xlu0 %320  ;;  %v423_v39 = vpop.permute.xlu1 %422  ;;  %v385_v47 = vrot.slane %v375_v35, 2  ;;  %v386_v49 = vrot.slane %v377_v38, 2  ;;  %v382_v50 = vrot.slane %v374_v36, 2  ;;  %v383_v51 = vrot.slane %v376_v37, 2 }
  0x81   : > { %v323_v33 = vmul.f32 %v321_v31, %v799_v6  ;;  %v324_v34 = vmul.f32 %v321_v31, %v312_v25  ;;  %v425_v48 = vmul.f32 %v423_v39, %v799_v6  ;;  %v426_v52 = vmul.f32 %v423_v39, %v312_v25 }
  0x82   : > { %v427_v53 = vmul.f32 %v423_v39, %v801_v7  ;;  %v428_v54 = vmul.f32 %v423_v39, %v313_v26  ;;  %v357_v56 = vsel %vm291_vm0, %v355_v41, %v356_v42  ;;  %v354_v57 = vsel %vm291_vm0, %v352_v43, %v353_v46 }
  0x83   : > { %329 = vrot.lane.b32.xlu1 %v324_v34, %s706_s12  ;;  %327 = vrot.lane.b32.xlu0 %v323_v33, %s706_s12  ;;  %v387_v58 = vsel %vm306_vm1, %v385_v47, %v386_v49  ;;  %v384_v59 = vsel %vm306_vm1, %v382_v50, %v383_v51  ;;  %v436_v60 = vrot.slane %v426_v52, 1  ;;  %v433_v62 = vrot.slane %v425_v48, 1  ;;  %v616_v34 = vld [vmem:[%s882_s3] ss:$0 sm:$0xff] }
  0x84   : > { %v402_v40 = vpop.permute.xlu0 %401  ;;  %v453_v55 = vpop.permute.xlu1 %452  ;;  %v437_v61 = vrot.slane %v428_v54, 1  ;;  %v434_v63 = vrot.slane %v427_v53, 1 }
  0x85   : > { %v404_v44 = vmul.f32 %v402_v40, %v799_v6  ;;  %v405_v45 = vmul.f32 %v402_v40, %v312_v25  ;;  %v455_v0 = vmul.f32 %v453_v55, %v799_v6  ;;  %v456_v1 = vmul.f32 %v453_v55, %v312_v25 }
  0x86   : > { %v457_v2 = vmul.f32 %v453_v55, %v801_v7  ;;  %v458_v3 = vmul.f32 %v453_v55, %v313_v26  ;;  %v438_v4 = vsel %vm291_vm0, %v436_v60, %v437_v61  ;;  %v435_v5 = vsel %vm291_vm0, %v433_v62, %v434_v63 }
  0x87   : > { %410 = vrot.lane.b32.xlu1 %v405_v45, %s707_s13  ;;  %408 = vrot.lane.b32.xlu0 %v404_v44, %s707_s13  ;;  %v466_v8 = vrot.slane %v456_v1, 2  ;;  %v463_v10 = vrot.slane %v455_v0, 2 }
  0x88   : > { %v467_v9 = vrot.slane %v458_v3, 2  ;;  %v464_v11 = vrot.slane %v457_v2, 2 }
  0x8a   : > { %v468_v6 = vsel %vm306_vm1, %v466_v8, %v467_v9  ;;  %v465_v7 = vsel %vm306_vm1, %v463_v10, %v464_v11 }
  0x8b   : > { %360 = vrot.lane.b32.xlu1 %v357_v56, %s706_s12  ;;  %358 = vrot.lane.b32.xlu0 %v354_v57, %s706_s12 }
  0x8f   : > { %390 = vrot.lane.b32.xlu1 %v387_v58, %s706_s12  ;;  %388 = vrot.lane.b32.xlu0 %v384_v59, %s706_s12 }
  0x93   : > { %441 = vrot.lane.b32.xlu1 %v438_v4, %s707_s13  ;;  %439 = vrot.lane.b32.xlu0 %v435_v5, %s707_s13 }
  0x97   : > { %471 = vrot.lane.b32.xlu1 %v468_v6, %s707_s13  ;;  %469 = vrot.lane.b32.xlu0 %v465_v7, %s707_s13 }
  0xf5   : > { %v330_v12 = vpop.permute.xlu1 %329  ;;  %v328_v13 = vpop.permute.xlu0 %327 }
  0xf6   : > { %v332_v16 = vsel %vm331_vm2, %v328_v13, %v330_v12 }
  0xf7   : > { %v334_v20 = vadd.f32 %v332_v16, %v819_v23 }
  0xf9   : > { %v411_v14 = vpop.permute.xlu1 %410  ;;  %v409_v15 = vpop.permute.xlu0 %408 }
  0xfa   : > { %v413_v27 = vsel %vm412_vm3, %v409_v15, %v411_v14 }
  0xfd   : > { %v361_v17 = vpop.permute.xlu1 %360  ;;  %v359_v18 = vpop.permute.xlu0 %358 }
  0xfe   : > { %v362_v19 = vsel %vm331_vm2, %v359_v18, %v361_v17 }
  0xff   : > { %v364_v21 = vadd.f32 %v362_v19, %v334_v20 }
 0x101   : > { %v391_v22 = vpop.permute.xlu1 %390  ;;  %v389_v24 = vpop.permute.xlu0 %388 }
 0x102   : > { %v392_v25 = vsel %vm331_vm2, %v389_v24, %v391_v22 }
 0x103   : > { %v394_v26 = vadd.f32 %v392_v25, %v364_v21 }
 0x105   : > { %v442_v28 = vpop.permute.xlu1 %441  ;;  %v440_v29 = vpop.permute.xlu0 %439  ;;  %v415_v30 = vadd.f32 %v413_v27, %v394_v26 }
 0x106   : > { %v443_v31 = vsel %vm412_vm3, %v440_v29, %v442_v28 }
 0x107   : > { %v445_v32 = vadd.f32 %v443_v31, %v415_v30 }
 0x109   : > { %v472_v33 = vpop.permute.xlu1 %471  ;;  %v470_v23 = vpop.permute.xlu0 %469 }
 0x10a   : > { %v473_v35 = vsel %vm412_vm3, %v470_v23, %v472_v33 }
 0x10b   : > { %v475_v36 = vadd.f32 %v473_v35, %v445_v32 }
 0x10d   : > { %v483_v37 = vadd.f32 %v616_v34, %v475_v36 }
 0x10f   : > { %v484_v38 = vmax.f32 %v483_v37, 0.0 }
 0x111   : > { %485 = vst [vmem:[%s272_s28] sm:$0xff] %v484_v38 }
 0x112 PF: > { %s14_s19 = sadd.s32 1, %s702_s19   ;;  %s884_s15 = smov %s694_s17 }
 0x113   : > { %p11_p9 = scmp.ge.s32.totalorder %s14_s19, 6   ;;  %s885_s16 = smov %s698_s18 }
 0x114   : > { %s886_s17 = smov %s889_s20  ;;  %s887_s18 = smov %s893_s21 }
 0x115   :  { %13 = sbr.rel (!%p11_p9) target bundleno = 3 (0x3), region = 69 }

</bundles_post_ra>
